<compile_context>
chip_gen: v5e
topology: v5e:2x2
jax: 0.10.0
libtpu: 0.0.40
codegen_flags: <defaults>
</compile_context>

<pallas_src>
import numpy as np
import jax
import jax.numpy as jnp
from jax.experimental import pallas as pl
from jax.experimental.pallas import tpu as pltpu

H = W = 28          # fc1 expects 32*14*14, so the conv input must be 28x28
C_OUT = 32
PH = PW = 14
P_POOL = PH * PW            # 196
FC_IN = C_OUT * P_POOL      # 6272
FC_OUT = 10


# ---------------------------------------------------------------------------
# Kernel 1: conv(3x3, pad=1) + bias + ReLU + 2x2 maxpool, B images per step.
#   patches_ref: (B, 4, 9, 196)  [corner k=dh*2+dw, tap q=kh*3+kw, pos p=ph*14+pw]
#   cw_ref:      (32, 9)
#   cb_ref:      (32, 1)
#   out_ref:     (B, 32, 196)    per-image (c, h, w) flatten order (PyTorch order)
# ---------------------------------------------------------------------------
def conv_relu_pool_kernel(patches_ref, cw_ref, cb_ref, out_ref):
    cw = cw_ref[...]                                   # (32, 9)  hoisted
    cb = cb_ref[...]                                   # (32, 1)
    bsz = patches_ref.shape[0]
    for b in range(bsz):                               # static unroll over batch block
        m = jnp.dot(cw, patches_ref[b, 0], preferred_element_type=jnp.float32)
        for k in range(1, 4):                          # max over 4 pool corners (VPU)
            m = jnp.maximum(
                m, jnp.dot(cw, patches_ref[b, k], preferred_element_type=jnp.float32))
        out_ref[b] = jnp.maximum(m + cb, 0.0)          # bias + ReLU (commute with max)


# ---------------------------------------------------------------------------
# Kernel 2: fully connected  (tm, 6272) @ (6272, 10) + (1, 10), weight resident.
# ---------------------------------------------------------------------------
def fc_kernel(x_ref, w_ref, b_ref, out_ref):
    out_ref[...] = (jnp.dot(x_ref[...], w_ref[...], preferred_element_type=jnp.float32)
                    + b_ref[...])


def _im2col_pool_grouped(x):
    """x: (N,1,28,28) -> (N, 4, 9, 196): [corner dh*2+dw, tap kh*3+kw, pos ph*14+pw]."""
    n = x.shape[0]
    xp = jnp.pad(x[:, 0], ((0, 0), (1, 1), (1, 1)))                  # (N, 30, 30)
    taps = [xp[:, kh:kh + H, kw:kw + W] for kh in range(3) for kw in range(3)]
    im = jnp.stack(taps, axis=1)                                     # (N, 9, 28, 28)
    im = im.reshape(n, 9, PH, 2, PW, 2)                              # (n, q, ph, dh, pw, dw)
    im = im.transpose(0, 3, 5, 1, 2, 4)                              # (n, dh, dw, q, ph, pw)
    return im.reshape(n, 4, 9, P_POOL)                               # (N, 4, 9, 196)


def _pick_conv_block(n):
    """Largest batch block that still leaves >=2 grid steps (v7x megacore)."""
    for b in (32, 16, 8, 4, 2):
        if n % b == 0 and n // b >= 2:
            return b
    return 1


def _pick_fc_rows(n):
    if n >= 512 and n % 256 == 0:
        return 256
    return n


def simple_cnn_forward(x, conv_w, conv_b, fc_w, fc_b):
    """x: (N, 1, 28, 28) float32  ->  logits (N, 10) float32."""
    n = x.shape[0]

    # --- glue: im2col grouped by pool corner + weight re-layouts -------------
    patches = _im2col_pool_grouped(x)                  # (N, 4, 9, 196)
    cw = conv_w.reshape(C_OUT, 9)                      # (32, 9)
    cb = conv_b.reshape(C_OUT, 1)                      # (32, 1)

    # --- Pallas kernel 1: conv + relu + pool, batch-blocked grid --------------
    bb = _pick_conv_block(n)
    pooled = pl.pallas_call(
        conv_relu_pool_kernel,
        out_shape=jax.ShapeDtypeStruct((n, C_OUT, P_POOL), jnp.float32),
        grid=(n // bb,),
        in_specs=[
            pl.BlockSpec((bb, 4, 9, P_POOL), lambda i: (i, 0, 0, 0)),
            pl.BlockSpec((C_OUT, 9), lambda i: (0, 0)),
            pl.BlockSpec((C_OUT, 1), lambda i: (0, 0)),
        ],
        out_specs=pl.BlockSpec((bb, C_OUT, P_POOL), lambda i: (i, 0, 0)),
        compiler_params=pltpu.CompilerParams(dimension_semantics=("parallel",)),
    )(patches, cw, cb)

    # --- glue: (c, h, w) flatten == PyTorch order -> free contiguous reshape --
    x_flat = pooled.reshape(n, FC_IN)                  # (N, 6272)
    fc_w_t = fc_w.T                                    # (6272, 10), no permutation needed
    fc_b_m = fc_b.reshape(1, FC_OUT)                   # (1, 10)

    # --- Pallas kernel 2: fully connected, weight resident, rows tiled --------
    tm = _pick_fc_rows(n)
    logits = pl.pallas_call(
        fc_kernel,
        out_shape=jax.ShapeDtypeStruct((n, FC_OUT), jnp.float32),
        grid=(n // tm,),
        in_specs=[
            pl.BlockSpec((tm, FC_IN), lambda i: (i, 0)),
            pl.BlockSpec((FC_IN, FC_OUT), lambda i: (0, 0)),
            pl.BlockSpec((1, FC_OUT), lambda i: (0, 0)),
        ],
        out_specs=pl.BlockSpec((tm, FC_OUT), lambda i: (i, 0)),
        compiler_params=pltpu.CompilerParams(dimension_semantics=("parallel",)),
    )(x_flat, fc_w_t, fc_b_m)

    return logits


def _reference_forward(x, conv_w, conv_b, fc_w, fc_b):
    """Pure-JAX reference reproducing the PyTorch forward (NCHW)."""
    y = jax.lax.conv_general_dilated(
        x, conv_w, window_strides=(1, 1), padding=((1, 1), (1, 1)),
        dimension_numbers=("NCHW", "OIHW", "NCHW"))
    y = y + conv_b[None, :, None, None]
    y = jnp.maximum(y, 0.0)
    y = jax.lax.reduce_window(y, -jnp.inf, jax.lax.max,
                              (1, 1, 2, 2), (1, 1, 2, 2), "VALID")
    y = y.reshape(x.shape[0], -1)                      # (N, 6272), (c, h, w) order
    return y @ fc_w.T + fc_b


if __name__ == "__main__":
    key = jax.random.PRNGKey(0)
    k1, k2, k3, k4, k5 = jax.random.split(key, 5)

    # Deterministic synthetic parameters (shapes from SimpleCNN.__init__).
    conv_w = jax.random.normal(k1, (C_OUT, 1, 3, 3), jnp.float32) * 0.1
    conv_b = jax.random.normal(k2, (C_OUT,), jnp.float32) * 0.1
    fc_w = jax.random.normal(k3, (FC_OUT, FC_IN), jnp.float32) * 0.01
    fc_b = jax.random.normal(k4, (FC_OUT,), jnp.float32) * 0.01

    # Batch 8, 1 channel, 28x28 (required by fc1 = 32*14*14) -> 2 grid steps.
    x = jax.random.normal(k5, (8, 1, H, W), jnp.float32)

    out = jax.block_until_ready(simple_cnn_forward(x, conv_w, conv_b, fc_w, fc_b))
    ref = jax.block_until_ready(_reference_forward(x, conv_w, conv_b, fc_w, fc_b))
    np.testing.assert_allclose(np.asarray(out), np.asarray(ref),
                               rtol=2e-2, atol=2e-2)
    assert out.shape == (8, FC_OUT)
    print("KERNEL_OK")
</pallas_src>

<mosaic_0001>
module attributes {stable_mosaic.version = 11 : i64} {
  func.func @conv_relu_pool_kernel(%arg0: i32, %arg1: memref<4x4x9x196xf32, #tpu.memory_space<vmem>>, %arg2: memref<32x9xf32, #tpu.memory_space<vmem>>, %arg3: memref<32x1xf32, #tpu.memory_space<vmem>>, %arg4: memref<4x32x196xf32, #tpu.memory_space<vmem>>) attributes {dimension_semantics = [#tpu.dimension_semantics<parallel>], iteration_bounds = array<i64: 2>, scalar_prefetch = 0 : i64, scratch_operands = 0 : i64, tpu.core_type = #tpu.core_type<tc>, window_params = [{transform_indices = @transform_0, window_bounds = array<i64: 4, 4, 9, 196>}, {pipeline_mode = #tpu.pipeline_mode<synchronous>, transform_indices = @transform_1, window_bounds = array<i64: 32, 9>}, {pipeline_mode = #tpu.pipeline_mode<synchronous>, transform_indices = @transform_2, window_bounds = array<i64: 32, 1>}, {transform_indices = @transform_3, window_bounds = array<i64: 4, 32, 196>}]} {
    %c0 = arith.constant 0 : index
    %c0_0 = arith.constant 0 : index
    %0 = vector.load %arg2[%c0, %c0_0] : memref<32x9xf32, #tpu.memory_space<vmem>>, vector<32x9xf32>
    %c0_1 = arith.constant 0 : index
    %c0_2 = arith.constant 0 : index
    %1 = vector.load %arg3[%c0_1, %c0_2] : memref<32x1xf32, #tpu.memory_space<vmem>>, vector<32x1xf32>
    %c0_3 = arith.constant 0 : index
    %c0_4 = arith.constant 0 : index
    %c0_5 = arith.constant 0 : index
    %c0_6 = arith.constant 0 : index
    %2 = vector.load %arg1[%c0_3, %c0_4, %c0_5, %c0_6] : memref<4x4x9x196xf32, #tpu.memory_space<vmem>>, vector<1x1x9x196xf32>
    %3 = vector.shape_cast %2 : vector<1x1x9x196xf32> to vector<9x196xf32>
    %cst = arith.constant dense<0.000000e+00> : vector<32x196xf32>
    %4 = tpu.matmul %0, %3, %cst {dimension_numbers = #tpu.dot_dimension_numbers<[1], [0], [0], [1], [0, 0, 1, 1], [], []>} : vector<32x9xf32>, vector<9x196xf32>, vector<32x196xf32> -> vector<32x196xf32>
    %c0_7 = arith.constant 0 : index
    %c1 = arith.constant 1 : index
    %c0_8 = arith.constant 0 : index
    %c0_9 = arith.constant 0 : index
    %5 = vector.load %arg1[%c0_7, %c1, %c0_8, %c0_9] : memref<4x4x9x196xf32, #tpu.memory_space<vmem>>, vector<1x1x9x196xf32>
    %6 = vector.shape_cast %5 : vector<1x1x9x196xf32> to vector<9x196xf32>
    %cst_10 = arith.constant dense<0.000000e+00> : vector<32x196xf32>
    %7 = tpu.matmul %0, %6, %cst_10 {dimension_numbers = #tpu.dot_dimension_numbers<[1], [0], [0], [1], [0, 0, 1, 1], [], []>} : vector<32x9xf32>, vector<9x196xf32>, vector<32x196xf32> -> vector<32x196xf32>
    %8 = arith.maximumf %4, %7 : vector<32x196xf32>
    %c0_11 = arith.constant 0 : index
    %c2 = arith.constant 2 : index
    %c0_12 = arith.constant 0 : index
    %c0_13 = arith.constant 0 : index
    %9 = vector.load %arg1[%c0_11, %c2, %c0_12, %c0_13] : memref<4x4x9x196xf32, #tpu.memory_space<vmem>>, vector<1x1x9x196xf32>
    %10 = vector.shape_cast %9 : vector<1x1x9x196xf32> to vector<9x196xf32>
    %cst_14 = arith.constant dense<0.000000e+00> : vector<32x196xf32>
    %11 = tpu.matmul %0, %10, %cst_14 {dimension_numbers = #tpu.dot_dimension_numbers<[1], [0], [0], [1], [0, 0, 1, 1], [], []>} : vector<32x9xf32>, vector<9x196xf32>, vector<32x196xf32> -> vector<32x196xf32>
    %12 = arith.maximumf %8, %11 : vector<32x196xf32>
    %c0_15 = arith.constant 0 : index
    %c3 = arith.constant 3 : index
    %c0_16 = arith.constant 0 : index
    %c0_17 = arith.constant 0 : index
    %13 = vector.load %arg1[%c0_15, %c3, %c0_16, %c0_17] : memref<4x4x9x196xf32, #tpu.memory_space<vmem>>, vector<1x1x9x196xf32>
    %14 = vector.shape_cast %13 : vector<1x1x9x196xf32> to vector<9x196xf32>
    %cst_18 = arith.constant dense<0.000000e+00> : vector<32x196xf32>
    %15 = tpu.matmul %0, %14, %cst_18 {dimension_numbers = #tpu.dot_dimension_numbers<[1], [0], [0], [1], [0, 0, 1, 1], [], []>} : vector<32x9xf32>, vector<9x196xf32>, vector<32x196xf32> -> vector<32x196xf32>
    %16 = arith.maximumf %12, %15 : vector<32x196xf32>
    %17 = vector.broadcast %1 : vector<32x1xf32> to vector<32x196xf32>
    %18 = arith.addf %16, %17 : vector<32x196xf32>
    %cst_19 = arith.constant 0.000000e+00 : f32
    %19 = vector.broadcast %cst_19 : f32 to vector<32x196xf32>
    %20 = arith.maximumf %18, %19 : vector<32x196xf32>
    %c0_20 = arith.constant 0 : index
    %c0_21 = arith.constant 0 : index
    %c0_22 = arith.constant 0 : index
    %21 = vector.load %arg4[%c0_20, %c0_21, %c0_22] : memref<4x32x196xf32, #tpu.memory_space<vmem>>, vector<1x32x196xf32>
    %22 = vector.shape_cast %21 : vector<1x32x196xf32> to vector<32x196xf32>
    %23 = vector.shape_cast %20 : vector<32x196xf32> to vector<1x32x196xf32>
    tpu.vector_store %arg4[%c0_20, %c0_21, %c0_22], %23 {strides = array<i32>} : memref<4x32x196xf32, #tpu.memory_space<vmem>>, vector<1x32x196xf32>,
    %c1_23 = arith.constant 1 : index
    %c0_24 = arith.constant 0 : index
    %c0_25 = arith.constant 0 : index
    %c0_26 = arith.constant 0 : index
    %24 = vector.load %arg1[%c1_23, %c0_24, %c0_25, %c0_26] : memref<4x4x9x196xf32, #tpu.memory_space<vmem>>, vector<1x1x9x196xf32>
    %25 = vector.shape_cast %24 : vector<1x1x9x196xf32> to vector<9x196xf32>
    %cst_27 = arith.constant dense<0.000000e+00> : vector<32x196xf32>
    %26 = tpu.matmul %0, %25, %cst_27 {dimension_numbers = #tpu.dot_dimension_numbers<[1], [0], [0], [1], [0, 0, 1, 1], [], []>} : vector<32x9xf32>, vector<9x196xf32>, vector<32x196xf32> -> vector<32x196xf32>
    %c1_28 = arith.constant 1 : index
    %c1_29 = arith.constant 1 : index
    %c0_30 = arith.constant 0 : index
    %c0_31 = arith.constant 0 : index
    %27 = vector.load %arg1[%c1_28, %c1_29, %c0_30, %c0_31] : memref<4x4x9x196xf32, #tpu.memory_space<vmem>>, vector<1x1x9x196xf32>
    %28 = vector.shape_cast %27 : vector<1x1x9x196xf32> to vector<9x196xf32>
    %cst_32 = arith.constant dense<0.000000e+00> : vector<32x196xf32>
    %29 = tpu.matmul %0, %28, %cst_32 {dimension_numbers = #tpu.dot_dimension_numbers<[1], [0], [0], [1], [0, 0, 1, 1], [], []>} : vector<32x9xf32>, vector<9x196xf32>, vector<32x196xf32> -> vector<32x196xf32>
    %30 = arith.maximumf %26, %29 : vector<32x196xf32>
    %c1_33 = arith.constant 1 : index
    %c2_34 = arith.constant 2 : index
    %c0_35 = arith.constant 0 : index
    %c0_36 = arith.constant 0 : index
    %31 = vector.load %arg1[%c1_33, %c2_34, %c0_35, %c0_36] : memref<4x4x9x196xf32, #tpu.memory_space<vmem>>, vector<1x1x9x196xf32>
    %32 = vector.shape_cast %31 : vector<1x1x9x196xf32> to vector<9x196xf32>
    %cst_37 = arith.constant dense<0.000000e+00> : vector<32x196xf32>
    %33 = tpu.matmul %0, %32, %cst_37 {dimension_numbers = #tpu.dot_dimension_numbers<[1], [0], [0], [1], [0, 0, 1, 1], [], []>} : vector<32x9xf32>, vector<9x196xf32>, vector<32x196xf32> -> vector<32x196xf32>
    %34 = arith.maximumf %30, %33 : vector<32x196xf32>
    %c1_38 = arith.constant 1 : index
    %c3_39 = arith.constant 3 : index
    %c0_40 = arith.constant 0 : index
    %c0_41 = arith.constant 0 : index
    %35 = vector.load %arg1[%c1_38, %c3_39, %c0_40, %c0_41] : memref<4x4x9x196xf32, #tpu.memory_space<vmem>>, vector<1x1x9x196xf32>
    %36 = vector.shape_cast %35 : vector<1x1x9x196xf32> to vector<9x196xf32>
    %cst_42 = arith.constant dense<0.000000e+00> : vector<32x196xf32>
    %37 = tpu.matmul %0, %36, %cst_42 {dimension_numbers = #tpu.dot_dimension_numbers<[1], [0], [0], [1], [0, 0, 1, 1], [], []>} : vector<32x9xf32>, vector<9x196xf32>, vector<32x196xf32> -> vector<32x196xf32>
    %38 = arith.maximumf %34, %37 : vector<32x196xf32>
    %39 = vector.broadcast %1 : vector<32x1xf32> to vector<32x196xf32>
    %40 = arith.addf %38, %39 : vector<32x196xf32>
    %cst_43 = arith.constant 0.000000e+00 : f32
    %41 = vector.broadcast %cst_43 : f32 to vector<32x196xf32>
    %42 = arith.maximumf %40, %41 : vector<32x196xf32>
    %c1_44 = arith.constant 1 : index
    %c0_45 = arith.constant 0 : index
    %c0_46 = arith.constant 0 : index
    %43 = vector.load %arg4[%c1_44, %c0_45, %c0_46] : memref<4x32x196xf32, #tpu.memory_space<vmem>>, vector<1x32x196xf32>
    %44 = vector.shape_cast %43 : vector<1x32x196xf32> to vector<32x196xf32>
    %45 = vector.shape_cast %42 : vector<32x196xf32> to vector<1x32x196xf32>
    tpu.vector_store %arg4[%c1_44, %c0_45, %c0_46], %45 {strides = array<i32>} : memref<4x32x196xf32, #tpu.memory_space<vmem>>, vector<1x32x196xf32>,
    %c2_47 = arith.constant 2 : index
    %c0_48 = arith.constant 0 : index
    %c0_49 = arith.constant 0 : index
    %c0_50 = arith.constant 0 : index
    %46 = vector.load %arg1[%c2_47, %c0_48, %c0_49, %c0_50] : memref<4x4x9x196xf32, #tpu.memory_space<vmem>>, vector<1x1x9x196xf32>
    %47 = vector.shape_cast %46 : vector<1x1x9x196xf32> to vector<9x196xf32>
    %cst_51 = arith.constant dense<0.000000e+00> : vector<32x196xf32>
    %48 = tpu.matmul %0, %47, %cst_51 {dimension_numbers = #tpu.dot_dimension_numbers<[1], [0], [0], [1], [0, 0, 1, 1], [], []>} : vector<32x9xf32>, vector<9x196xf32>, vector<32x196xf32> -> vector<32x196xf32>
    %c2_52 = arith.constant 2 : index
    %c1_53 = arith.constant 1 : index
    %c0_54 = arith.constant 0 : index
    %c0_55 = arith.constant 0 : index
    %49 = vector.load %arg1[%c2_52, %c1_53, %c0_54, %c0_55] : memref<4x4x9x196xf32, #tpu.memory_space<vmem>>, vector<1x1x9x196xf32>
    %50 = vector.shape_cast %49 : vector<1x1x9x196xf32> to vector<9x196xf32>
    %cst_56 = arith.constant dense<0.000000e+00> : vector<32x196xf32>
    %51 = tpu.matmul %0, %50, %cst_56 {dimension_numbers = #tpu.dot_dimension_numbers<[1], [0], [0], [1], [0, 0, 1, 1], [], []>} : vector<32x9xf32>, vector<9x196xf32>, vector<32x196xf32> -> vector<32x196xf32>
    %52 = arith.maximumf %48, %51 : vector<32x196xf32>
    %c2_57 = arith.constant 2 : index
    %c2_58 = arith.constant 2 : index
    %c0_59 = arith.constant 0 : index
    %c0_60 = arith.constant 0 : index
    %53 = vector.load %arg1[%c2_57, %c2_58, %c0_59, %c0_60] : memref<4x4x9x196xf32, #tpu.memory_space<vmem>>, vector<1x1x9x196xf32>
    %54 = vector.shape_cast %53 : vector<1x1x9x196xf32> to vector<9x196xf32>
    %cst_61 = arith.constant dense<0.000000e+00> : vector<32x196xf32>
    %55 = tpu.matmul %0, %54, %cst_61 {dimension_numbers = #tpu.dot_dimension_numbers<[1], [0], [0], [1], [0, 0, 1, 1], [], []>} : vector<32x9xf32>, vector<9x196xf32>, vector<32x196xf32> -> vector<32x196xf32>
    %56 = arith.maximumf %52, %55 : vector<32x196xf32>
    %c2_62 = arith.constant 2 : index
    %c3_63 = arith.constant 3 : index
    %c0_64 = arith.constant 0 : index
    %c0_65 = arith.constant 0 : index
    %57 = vector.load %arg1[%c2_62, %c3_63, %c0_64, %c0_65] : memref<4x4x9x196xf32, #tpu.memory_space<vmem>>, vector<1x1x9x196xf32>
    %58 = vector.shape_cast %57 : vector<1x1x9x196xf32> to vector<9x196xf32>
    %cst_66 = arith.constant dense<0.000000e+00> : vector<32x196xf32>
    %59 = tpu.matmul %0, %58, %cst_66 {dimension_numbers = #tpu.dot_dimension_numbers<[1], [0], [0], [1], [0, 0, 1, 1], [], []>} : vector<32x9xf32>, vector<9x196xf32>, vector<32x196xf32> -> vector<32x196xf32>
    %60 = arith.maximumf %56, %59 : vector<32x196xf32>
    %61 = vector.broadcast %1 : vector<32x1xf32> to vector<32x196xf32>
    %62 = arith.addf %60, %61 : vector<32x196xf32>
    %cst_67 = arith.constant 0.000000e+00 : f32
    %63 = vector.broadcast %cst_67 : f32 to vector<32x196xf32>
    %64 = arith.maximumf %62, %63 : vector<32x196xf32>
    %c2_68 = arith.constant 2 : index
    %c0_69 = arith.constant 0 : index
    %c0_70 = arith.constant 0 : index
    %65 = vector.load %arg4[%c2_68, %c0_69, %c0_70] : memref<4x32x196xf32, #tpu.memory_space<vmem>>, vector<1x32x196xf32>
    %66 = vector.shape_cast %65 : vector<1x32x196xf32> to vector<32x196xf32>
    %67 = vector.shape_cast %64 : vector<32x196xf32> to vector<1x32x196xf32>
    tpu.vector_store %arg4[%c2_68, %c0_69, %c0_70], %67 {strides = array<i32>} : memref<4x32x196xf32, #tpu.memory_space<vmem>>, vector<1x32x196xf32>,
    %c3_71 = arith.constant 3 : index
    %c0_72 = arith.constant 0 : index
    %c0_73 = arith.constant 0 : index
    %c0_74 = arith.constant 0 : index
    %68 = vector.load %arg1[%c3_71, %c0_72, %c0_73, %c0_74] : memref<4x4x9x196xf32, #tpu.memory_space<vmem>>, vector<1x1x9x196xf32>
    %69 = vector.shape_cast %68 : vector<1x1x9x196xf32> to vector<9x196xf32>
    %cst_75 = arith.constant dense<0.000000e+00> : vector<32x196xf32>
    %70 = tpu.matmul %0, %69, %cst_75 {dimension_numbers = #tpu.dot_dimension_numbers<[1], [0], [0], [1], [0, 0, 1, 1], [], []>} : vector<32x9xf32>, vector<9x196xf32>, vector<32x196xf32> -> vector<32x196xf32>
    %c3_76 = arith.constant 3 : index
    %c1_77 = arith.constant 1 : index
    %c0_78 = arith.constant 0 : index
    %c0_79 = arith.constant 0 : index
    %71 = vector.load %arg1[%c3_76, %c1_77, %c0_78, %c0_79] : memref<4x4x9x196xf32, #tpu.memory_space<vmem>>, vector<1x1x9x196xf32>
    %72 = vector.shape_cast %71 : vector<1x1x9x196xf32> to vector<9x196xf32>
    %cst_80 = arith.constant dense<0.000000e+00> : vector<32x196xf32>
    %73 = tpu.matmul %0, %72, %cst_80 {dimension_numbers = #tpu.dot_dimension_numbers<[1], [0], [0], [1], [0, 0, 1, 1], [], []>} : vector<32x9xf32>, vector<9x196xf32>, vector<32x196xf32> -> vector<32x196xf32>
    %74 = arith.maximumf %70, %73 : vector<32x196xf32>
    %c3_81 = arith.constant 3 : index
    %c2_82 = arith.constant 2 : index
    %c0_83 = arith.constant 0 : index
    %c0_84 = arith.constant 0 : index
    %75 = vector.load %arg1[%c3_81, %c2_82, %c0_83, %c0_84] : memref<4x4x9x196xf32, #tpu.memory_space<vmem>>, vector<1x1x9x196xf32>
    %76 = vector.shape_cast %75 : vector<1x1x9x196xf32> to vector<9x196xf32>
    %cst_85 = arith.constant dense<0.000000e+00> : vector<32x196xf32>
    %77 = tpu.matmul %0, %76, %cst_85 {dimension_numbers = #tpu.dot_dimension_numbers<[1], [0], [0], [1], [0, 0, 1, 1], [], []>} : vector<32x9xf32>, vector<9x196xf32>, vector<32x196xf32> -> vector<32x196xf32>
    %78 = arith.maximumf %74, %77 : vector<32x196xf32>
    %c3_86 = arith.constant 3 : index
    %c3_87 = arith.constant 3 : index
    %c0_88 = arith.constant 0 : index
    %c0_89 = arith.constant 0 : index
    %79 = vector.load %arg1[%c3_86, %c3_87, %c0_88, %c0_89] : memref<4x4x9x196xf32, #tpu.memory_space<vmem>>, vector<1x1x9x196xf32>
    %80 = vector.shape_cast %79 : vector<1x1x9x196xf32> to vector<9x196xf32>
    %cst_90 = arith.constant dense<0.000000e+00> : vector<32x196xf32>
    %81 = tpu.matmul %0, %80, %cst_90 {dimension_numbers = #tpu.dot_dimension_numbers<[1], [0], [0], [1], [0, 0, 1, 1], [], []>} : vector<32x9xf32>, vector<9x196xf32>, vector<32x196xf32> -> vector<32x196xf32>
    %82 = arith.maximumf %78, %81 : vector<32x196xf32>
    %83 = vector.broadcast %1 : vector<32x1xf32> to vector<32x196xf32>
    %84 = arith.addf %82, %83 : vector<32x196xf32>
    %cst_91 = arith.constant 0.000000e+00 : f32
    %85 = vector.broadcast %cst_91 : f32 to vector<32x196xf32>
    %86 = arith.maximumf %84, %85 : vector<32x196xf32>
    %c3_92 = arith.constant 3 : index
    %c0_93 = arith.constant 0 : index
    %c0_94 = arith.constant 0 : index
    %87 = vector.load %arg4[%c3_92, %c0_93, %c0_94] : memref<4x32x196xf32, #tpu.memory_space<vmem>>, vector<1x32x196xf32>
    %88 = vector.shape_cast %87 : vector<1x32x196xf32> to vector<32x196xf32>
    %89 = vector.shape_cast %86 : vector<32x196xf32> to vector<1x32x196xf32>
    tpu.vector_store %arg4[%c3_92, %c0_93, %c0_94], %89 {strides = array<i32>} : memref<4x32x196xf32, #tpu.memory_space<vmem>>, vector<1x32x196xf32>,
    return
  }
  func.func @transform_0(%arg0: i32) -> (i32, i32, i32, i32) {
    %c0_i32 = arith.constant 0 : i32
    %c0_i32_0 = arith.constant 0 : i32
    %c0_i32_1 = arith.constant 0 : i32
    %c0_i32_2 = arith.constant 0 : i32
    return %arg0, %c0_i32, %c0_i32_0, %c0_i32_1 : i32, i32, i32, i32
  }
  func.func @transform_1(%arg0: i32) -> (i32, i32) {
    %c0_i32 = arith.constant 0 : i32
    %c0_i32_0 = arith.constant 0 : i32
    %c0_i32_1 = arith.constant 0 : i32
    return %c0_i32, %c0_i32_0 : i32, i32
  }
  func.func @transform_2(%arg0: i32) -> (i32, i32) {
    %c0_i32 = arith.constant 0 : i32
    %c0_i32_0 = arith.constant 0 : i32
    %c0_i32_1 = arith.constant 0 : i32
    return %c0_i32, %c0_i32_0 : i32, i32
  }
  func.func @transform_3(%arg0: i32) -> (i32, i32, i32) {
    %c0_i32 = arith.constant 0 : i32
    %c0_i32_0 = arith.constant 0 : i32
    %c0_i32_1 = arith.constant 0 : i32
    return %arg0, %c0_i32, %c0_i32_0 : i32, i32, i32
  }
}

</mosaic_0001>

<bundles_post_ra>
// kernel: tpu_custom_call.1
= control target key start
LH: loop header
LB: loop body
LE: loop exit
PB: predicated region body
PF: predicated region fallthrough
CT: control target
= control target key end

     0   :  { %8 = vsyncpa [#allocation3], 0  ;;  %s2606_s0 = inlined_call_operand.vmem [shape: f32[8,4,9,196], index: 0, kind: input, shape index: {}]   ;;  %s2607_s1 = inlined_call_operand.vmem [shape: f32[32,9], index: 1, kind: input, shape index: {}]   ;;  %s2608_s2 = inlined_call_operand.vmem [shape: f32[32,1], index: 2, kind: input, shape index: {}]   ;;  %s2609_s3 = inlined_call_operand.hbm [shape: f32[8,32,196], index: 3, kind: output, shape index: {}]  }
   0x1   :  { %10 = vsyncpa [#allocation3 + $0x1], 0  ;;  %s1987_s12 = smov 0   ;;  %s1989_s13 = smov 0  }
   0x2   :  { %s1991_s14 = smov 0   ;;  %s1993_s15 = smov 0  }
   0x3 LB: > { %s2008_s16 = sadd.s32 4294967295, %s1962_s15   ;;  %s1595_s17 = sadd.s32 4294967294, %s1962_s15   ;;  %s1962_s15 = sphi %s1993_s15, %s2615_s15   ;;  %s1958_s14 = sphi %s1991_s14, %s2614_s14   ;;  %s1954_s13 = sphi %s1989_s13, %s2613_s13   ;;  %s1950_s12 = sphi %s1987_s12, %s2612_s12  }
   0x4   : > { %s2012_s18 = sadd.s32 1, %s1962_s15   ;;  %s91_s19 = sadd.s32 1, %s1958_s14 }
   0x5   : > { %s88_s20 = ssub.s32 %s1962_s15, %s2012_s18  ;;  %p101_p0 = scmp.ne.s32.totalorder %s1958_s14, %s1954_s13 }
   0x6   : > { %p89_p1 = scmp.eq.s32.totalorder %s88_s20, 0  ;;  %p102_p2 = scmp.eq.s32.totalorder %s2008_s16, 1 }
   0x7   : > { %p107_p3 = scmp.ne.s32.totalorder %s1954_s13, %s1950_s12  ;;  %p108_p4 = scmp.eq.s32.totalorder %s1595_s17, 1 }
   0x8   : > { %s2023_s21 = scalar_select %p89_p1, %s1958_s14, %s91_s19  }
   0x9   : > { %p2025_p5 = por %p102_p2, %p101_p0  ;;  %p2029_p6 = por %p108_p4, %p107_p3 }
   0xa   : > { %p1598_p7 = scmp.ge.s32.totalorder %s1962_s15, 1  ;;  %p142_p8 = scmp.lt.s32.totalorder %s1962_s15, 3 }
   0xc   : > { %p143_p9 = pnand %p1598_p7, %p142_p8 }
   0xd   : > { %s1600_s24 = sshll.u32 (!%p143_p9), %s2008_s16, 2  ;;  %s164_s27 = sand.u32 (!%p143_p9), 1, %s1954_s13  }
   0xe   : > { %146 = sbr.rel (%p143_p9) target bundleno = 419 (0x1a3), region = 32  ;;  %p168_p10 = scmp.lt.s32.totalorder (!%p143_p9), %s1600_s24, 7 }
   0xf   : > { %s1599_s29 = sshll.u32 (!%p143_p9), %s164_s27, 8  ;;  %s1517_s8 = scalar_lea.sflag (!%p143_p9), [#allocation3], %s164_s27 }
  0x10   : > { %s2376_s30 = scalar_lea.vmem (!%p143_p9), [#allocation2], %s1599_s29  ;;  %s1920_s19 = scalar_lea.hbm (!%p143_p9), %s2609_s3, 512 }
  0x13   : > { %s2617_s24 = smov (!%p168_p10, %s1600_s24), 7  ;;  %vm200_vm0 = vcmask 1040384   ;;  %v2056_v8 = vld [vmem:[%s2607_s1] sm:$0xff]  ;;  %vm187_vm1 = vcmask 72704   ;;  %v2085_v21 = vld [vmem:[%s2607_s1 + $0x8] sm:$0xff]  ;;  %v2102_v22 = vld [vmem:[%s2607_s1 + $0x10] sm:$0xff] }
  0x14   : > { %s1853_s25 = sshll.u32 %s2617_s24, 7  ;;  %v179_v25 = vld [vmem:[%s2608_s2] sm:$0xff]  ;;  %v1964_v28 = vmov 0   ;;  %v2122_v29 = vld [vmem:[%s2607_s1 + $0x18] sm:$0xff]  ;;  %v180_v30 = vld [vmem:[%s2608_s2 + $0x8] sm:$0xff]  ;;  %vm533_vm2 = vcmask 556032  }
  0x15   : > { %s2039_s28 = scalar_lea.vmem %s2606_s0, %s1853_s25  ;;  %1898 = vset.pattern.permute.xlu0 %v1964_v28  ;;  %1899 = vset.pattern.permute.xlu1 %v1964_v28  ;;  %v181_v33 = vld [vmem:[%s2608_s2 + $0x10] sm:$0xff]  ;;  %v182_v36 = vld [vmem:[%s2608_s2 + $0x18] sm:$0xff] }
  0x16   : > { %v185_v0 = vld [vmem:[%s2039_s28 + $0x10] sm:$0x1]  ;;  %v186_v1 = vld [vmem:[%s2039_s28 + $0x18] sm:$0x1]  ;;  %v183_v4 = vld [vmem:[%s2039_s28] sm:$0xff]  ;;  %498 = vperm.xlu0 %1898, %v179_v25   ;;  %508 = vperm.xlu1 %1899, %v181_v33  }
  0x17   : > { %v1615_v2 = vld [vmem:[%s2039_s28 + $0x30] sm:$0x1]  ;;  %1603 = vmatpush.msk.msra.mxu0 %vm200_vm0, %v185_v0  ;;  %1608 = vmatpush.msk.msra.mxu1 %vm200_vm0, %v186_v1  ;;  %v1616_v3 = vld [vmem:[%s2039_s28 + $0x38] sm:$0x1]  ;;  %v184_v5 = vld [vmem:[%s2039_s28 + $0x8] sm:$0xff] }
  0x18   : > { %1617 = vmatpush.msk.msra.mxu2 %vm200_vm0, %v1615_v2  ;;  %1622 = vmatpush.msk.msra.mxu3 %vm200_vm0, %v1616_v3  ;;  %v1613_v6 = vld [vmem:[%s2039_s28 + $0x20] sm:$0xff]  ;;  %v1614_v7 = vld [vmem:[%s2039_s28 + $0x28] sm:$0xff]  ;;  %v1643_v9 = vld [vmem:[%s2039_s28 + $0x70] sm:$0x1] }
  0x19   : > { %222 = vmatpush.msra.mxu0 %v183_v4  ;;  %251 = vmatpush.msra.mxu1 %v184_v5  ;;  %v1644_v10 = vld [vmem:[%s2039_s28 + $0x78] sm:$0x1]  ;;  %v1629_v11 = vld [vmem:[%s2039_s28 + $0x50] sm:$0x1]  ;;  %v1641_v13 = vld [vmem:[%s2039_s28 + $0x60] sm:$0xff] }
  0x1a   : > { %291 = vmatpush.msra.mxu2 %v1613_v6  ;;  %320 = vmatpush.msra.mxu3 %v1614_v7  ;;  %v1630_v12 = vld [vmem:[%s2039_s28 + $0x58] sm:$0x1]  ;;  %v1642_v14 = vld [vmem:[%s2039_s28 + $0x68] sm:$0xff]  ;;  %v1627_v15 = vld [vmem:[%s2039_s28 + $0x40] sm:$0xff] }
  0x1b   : > { %1604 = vmatmul.msk.f32.vlgmr.msra.gmra.mxu0 %vm187_vm1, %v2056_v8  ;;  %1609 = vmatmul.msk.f32.vlgmr.msra.gmra.mxu1 %vm187_vm1, %v2056_v8  ;;  %v1628_v16 = vld [vmem:[%s2039_s28 + $0x48] sm:$0xff]  ;;  %v1671_v17 = vld [vmem:[%s2039_s28 + $0xb0] sm:$0x1]  ;;  %v1672_v18 = vld [vmem:[%s2039_s28 + $0xb8] sm:$0x1] }
  0x1c   : > { %1618 = vmatmul.msk.f32.vlgmr.msra.gmra.mxu2 %vm187_vm1, %v2056_v8  ;;  %1623 = vmatmul.msk.f32.vlgmr.msra.gmra.mxu3 %vm187_vm1, %v2056_v8  ;;  %v1657_v19 = vld [vmem:[%s2039_s28 + $0x90] sm:$0x1]  ;;  %v1658_v20 = vld [vmem:[%s2039_s28 + $0x98] sm:$0x1]  ;;  %v1669_v23 = vld [vmem:[%s2039_s28 + $0xa0] sm:$0xff] }
  0x1d   : > { %1645 = vmatpush.msk.msrb.mxu2 %vm200_vm0, %v1643_v9  ;;  %1650 = vmatpush.msk.msrb.mxu3 %vm200_vm0, %v1644_v10  ;;  %v1670_v24 = vld [vmem:[%s2039_s28 + $0xa8] sm:$0xff]  ;;  %v1655_v26 = vld [vmem:[%s2039_s28 + $0x80] sm:$0xff]  ;;  %v1699_v31 = vld [vmem:[%s2039_s28 + $0xf0] sm:$0x1] }
  0x1e   : > { %1631 = vmatpush.msk.msrb.mxu0 %vm200_vm0, %v1629_v11  ;;  %1636 = vmatpush.msk.msrb.mxu1 %vm200_vm0, %v1630_v12  ;;  %v1656_v27 = vld [vmem:[%s2039_s28 + $0x88] sm:$0xff]  ;;  %v1700_v32 = vld [vmem:[%s2039_s28 + $0xf8] sm:$0x1]  ;;  %v1685_v34 = vld [vmem:[%s2039_s28 + $0xd0] sm:$0x1] }
  0x1f   : > { %445 = vmatpush.msrb.mxu2 %v1641_v13  ;;  %474 = vmatpush.msrb.mxu3 %v1642_v14  ;;  %v1686_v35 = vld [vmem:[%s2039_s28 + $0xd8] sm:$0x1]  ;;  %v1697_v37 = vld [vmem:[%s2039_s28 + $0xe0] sm:$0xff]  ;;  %v1698_v38 = vld [vmem:[%s2039_s28 + $0xe8] sm:$0xff] }
  0x20   : > { %368 = vmatpush.msrb.mxu0 %v1627_v15  ;;  %397 = vmatpush.msrb.mxu1 %v1628_v16  ;;  %v1683_v39 = vld [vmem:[%s2039_s28 + $0xc0] sm:$0xff]  ;;  %v1684_v40 = vld [vmem:[%s2039_s28 + $0xc8] sm:$0xff]  ;;  %v1735_v41 = vld [vmem:[%s2039_s28 + $0x130] sm:$0x1] }
  0x21   : > { %1673 = vmatpush.msk.msra.mxu2 %vm200_vm0, %v1671_v17  ;;  %1678 = vmatpush.msk.msra.mxu3 %vm200_vm0, %v1672_v18  ;;  %v1736_v42 = vld [vmem:[%s2039_s28 + $0x138] sm:$0x1]  ;;  %v1721_v43 = vld [vmem:[%s2039_s28 + $0x110] sm:$0x1]  ;;  %v1733_v45 = vld [vmem:[%s2039_s28 + $0x120] sm:$0xff] }
  0x22   : > { %1659 = vmatpush.msk.msra.mxu0 %vm200_vm0, %v1657_v19  ;;  %1664 = vmatpush.msk.msra.mxu1 %vm200_vm0, %v1658_v20  ;;  %v1722_v44 = vld [vmem:[%s2039_s28 + $0x118] sm:$0x1]  ;;  %v1734_v46 = vld [vmem:[%s2039_s28 + $0x128] sm:$0xff]  ;;  %v1719_v47 = vld [vmem:[%s2039_s28 + $0x100] sm:$0xff] }
  0x23   : > { %1605 = vmatmul.msk.f32.gmra.mxu0 %vm187_vm1, %v2085_v21  ;;  %1610 = vmatmul.msk.f32.gmra.mxu1 %vm187_vm1, %v2085_v21  ;;  %v1720_v48 = vld [vmem:[%s2039_s28 + $0x108] sm:$0xff]  ;;  %v1763_v49 = vld [vmem:[%s2039_s28 + $0x170] sm:$0x1]  ;;  %v1764_v50 = vld [vmem:[%s2039_s28 + $0x178] sm:$0x1] }
  0x24   : > { %1619 = vmatmul.msk.f32.gmra.mxu2 %vm187_vm1, %v2085_v21  ;;  %1624 = vmatmul.msk.f32.gmra.mxu3 %vm187_vm1, %v2085_v21  ;;  %v1749_v51 = vld [vmem:[%s2039_s28 + $0x150] sm:$0x1]  ;;  %v1750_v52 = vld [vmem:[%s2039_s28 + $0x158] sm:$0x1]  ;;  %v1761_v53 = vld [vmem:[%s2039_s28 + $0x160] sm:$0xff] }
  0x25   : > { %636 = vmatpush.msra.mxu2 %v1669_v23  ;;  %665 = vmatpush.msra.mxu3 %v1670_v24  ;;  %v1762_v54 = vld [vmem:[%s2039_s28 + $0x168] sm:$0xff]  ;;  %v1747_v55 = vld [vmem:[%s2039_s28 + $0x140] sm:$0xff]  ;;  %v1799_v59 = vld [vmem:[%s2039_s28 + $0x1b0] sm:$0x1] }
  0x26   : > { %567 = vmatpush.msra.mxu0 %v1655_v26  ;;  %596 = vmatpush.msra.mxu1 %v1656_v27  ;;  %v1748_v56 = vld [vmem:[%s2039_s28 + $0x148] sm:$0xff]  ;;  %v1800_v60 = vld [vmem:[%s2039_s28 + $0x1b8] sm:$0x1]  ;;  %v1785_v1 = vld [vmem:[%s2039_s28 + $0x190] sm:$0x1] }
  0x27   : > { %503 = vperm.xlu0 %1898, %v180_v30   ;;  %513 = vperm.xlu1 %1899, %v182_v36   ;;  %v1786_v2 = vld [vmem:[%s2039_s28 + $0x198] sm:$0x1]  ;;  %v1797_v10 = vld [vmem:[%s2039_s28 + $0x1a0] sm:$0xff]  ;;  %v1798_v11 = vld [vmem:[%s2039_s28 + $0x1a8] sm:$0xff] }
  0x28   : > { %v1783_v14 = vld [vmem:[%s2039_s28 + $0x180] sm:$0xff]  ;;  %v1784_v15 = vld [vmem:[%s2039_s28 + $0x188] sm:$0xff]  ;;  %v1827_v30 = vld [vmem:[%s2039_s28 + $0x1f0] sm:$0x1] }
  0x29   : > { %v1813_v36 = vld [vmem:[%s2039_s28 + $0x1d0] sm:$0x1] }
  0x2b   : > { %1606 = vmatmul.msk.f32.gmra.mxu0 %vm187_vm1, %v2102_v22  ;;  %1611 = vmatmul.msk.f32.gmra.mxu1 %vm187_vm1, %v2102_v22 }
  0x2c   : > { %1620 = vmatmul.msk.f32.gmra.mxu2 %vm187_vm1, %v2102_v22  ;;  %1625 = vmatmul.msk.f32.gmra.mxu3 %vm187_vm1, %v2102_v22 }
  0x33   : > { %1607 = vmatmul.msk.f32.gmra.mxu0 %vm187_vm1, %v2122_v29  ;;  %1612 = vmatmul.msk.f32.gmra.mxu1 %vm187_vm1, %v2122_v29 }
  0x34   : > { %1621 = vmatmul.msk.f32.gmra.mxu2 %vm187_vm1, %v2122_v29  ;;  %1626 = vmatmul.msk.f32.gmra.mxu3 %vm187_vm1, %v2122_v29 }
  0x3b   : > { %1632 = vmatmul.msk.f32.vlgmr.msrb.gmra.mxu0 %vm187_vm1, %v2056_v8  ;;  %1637 = vmatmul.msk.f32.vlgmr.msrb.gmra.mxu1 %vm187_vm1, %v2056_v8 }
  0x3c   : > { %1646 = vmatmul.msk.f32.vlgmr.msrb.gmra.mxu2 %vm187_vm1, %v2056_v8  ;;  %1651 = vmatmul.msk.f32.vlgmr.msrb.gmra.mxu3 %vm187_vm1, %v2056_v8 }
  0x3d   : > { %1701 = vmatpush.msk.msrb.mxu2 %vm200_vm0, %v1699_v31  ;;  %1706 = vmatpush.msk.msrb.mxu3 %vm200_vm0, %v1700_v32  ;;  %v1828_v31 = vld [vmem:[%s2039_s28 + $0x1f8] sm:$0x1] }
  0x3e   : > { %1687 = vmatpush.msk.msrb.mxu0 %vm200_vm0, %v1685_v34  ;;  %1692 = vmatpush.msk.msrb.mxu1 %vm200_vm0, %v1686_v35 }
  0x3f   : > { %790 = vmatpush.msrb.mxu2 %v1697_v37  ;;  %819 = vmatpush.msrb.mxu3 %v1698_v38  ;;  %v1814_v37 = vld [vmem:[%s2039_s28 + $0x1d8] sm:$0x1] }
  0x40   : > { %713 = vmatpush.msrb.mxu0 %v1683_v39  ;;  %742 = vmatpush.msrb.mxu1 %v1684_v40 }
  0x43   : > { %1633 = vmatmul.msk.f32.gmra.mxu0 %vm187_vm1, %v2085_v21  ;;  %1638 = vmatmul.msk.f32.gmra.mxu1 %vm187_vm1, %v2085_v21 }
  0x44   : > { %1647 = vmatmul.msk.f32.gmra.mxu2 %vm187_vm1, %v2085_v21  ;;  %1652 = vmatmul.msk.f32.gmra.mxu3 %vm187_vm1, %v2085_v21 }
  0x4b   : > { %1634 = vmatmul.msk.f32.gmra.mxu0 %vm187_vm1, %v2102_v22  ;;  %1639 = vmatmul.msk.f32.gmra.mxu1 %vm187_vm1, %v2102_v22 }
  0x4c   : > { %1648 = vmatmul.msk.f32.gmra.mxu2 %vm187_vm1, %v2102_v22  ;;  %1653 = vmatmul.msk.f32.gmra.mxu3 %vm187_vm1, %v2102_v22 }
  0x53   : > { %1635 = vmatmul.msk.f32.gmra.mxu0 %vm187_vm1, %v2122_v29  ;;  %1640 = vmatmul.msk.f32.gmra.mxu1 %vm187_vm1, %v2122_v29 }
  0x54   : > { %1649 = vmatmul.msk.f32.gmra.mxu2 %vm187_vm1, %v2122_v29  ;;  %1654 = vmatmul.msk.f32.gmra.mxu3 %vm187_vm1, %v2122_v29 }
  0x5b   : > { %1660 = vmatmul.msk.f32.vlgmr.msra.gmra.mxu0 %vm187_vm1, %v2056_v8  ;;  %1665 = vmatmul.msk.f32.vlgmr.msra.gmra.mxu1 %vm187_vm1, %v2056_v8 }
  0x5c   : > { %1674 = vmatmul.msk.f32.vlgmr.msra.gmra.mxu2 %vm187_vm1, %v2056_v8  ;;  %1679 = vmatmul.msk.f32.vlgmr.msra.gmra.mxu3 %vm187_vm1, %v2056_v8 }
  0x5d   : > { %1737 = vmatpush.msk.msra.mxu2 %vm200_vm0, %v1735_v41  ;;  %1742 = vmatpush.msk.msra.mxu3 %vm200_vm0, %v1736_v42 }
  0x5e   : > { %1723 = vmatpush.msk.msra.mxu0 %vm200_vm0, %v1721_v43  ;;  %1728 = vmatpush.msk.msra.mxu1 %vm200_vm0, %v1722_v44 }
  0x5f   : > { %961 = vmatpush.msra.mxu2 %v1733_v45  ;;  %990 = vmatpush.msra.mxu3 %v1734_v46 }
  0x60   : > { %892 = vmatpush.msra.mxu0 %v1719_v47  ;;  %921 = vmatpush.msra.mxu1 %v1720_v48 }
  0x63   : > { %1661 = vmatmul.msk.f32.gmra.mxu0 %vm187_vm1, %v2085_v21  ;;  %1666 = vmatmul.msk.f32.gmra.mxu1 %vm187_vm1, %v2085_v21 }
  0x64   : > { %1675 = vmatmul.msk.f32.gmra.mxu2 %vm187_vm1, %v2085_v21  ;;  %1680 = vmatmul.msk.f32.gmra.mxu3 %vm187_vm1, %v2085_v21 }
  0x6b   : > { %1662 = vmatmul.msk.f32.gmra.mxu0 %vm187_vm1, %v2102_v22  ;;  %1667 = vmatmul.msk.f32.gmra.mxu1 %vm187_vm1, %v2102_v22 }
  0x6c   : > { %1676 = vmatmul.msk.f32.gmra.mxu2 %vm187_vm1, %v2102_v22  ;;  %1681 = vmatmul.msk.f32.gmra.mxu3 %vm187_vm1, %v2102_v22 }
  0x73   : > { %1663 = vmatmul.msk.f32.gmra.mxu0 %vm187_vm1, %v2122_v29  ;;  %1668 = vmatmul.msk.f32.gmra.mxu1 %vm187_vm1, %v2122_v29 }
  0x74   : > { %1677 = vmatmul.msk.f32.gmra.mxu2 %vm187_vm1, %v2122_v29  ;;  %1682 = vmatmul.msk.f32.gmra.mxu3 %vm187_vm1, %v2122_v29 }
  0x7b   : > { %1688 = vmatmul.msk.f32.vlgmr.msrb.gmra.mxu0 %vm187_vm1, %v2056_v8  ;;  %1693 = vmatmul.msk.f32.vlgmr.msrb.gmra.mxu1 %vm187_vm1, %v2056_v8 }
  0x7c   : > { %1702 = vmatmul.msk.f32.vlgmr.msrb.gmra.mxu2 %vm187_vm1, %v2056_v8  ;;  %1707 = vmatmul.msk.f32.vlgmr.msrb.gmra.mxu3 %vm187_vm1, %v2056_v8 }
  0x7d   : > { %1765 = vmatpush.msk.msrb.mxu2 %vm200_vm0, %v1763_v49  ;;  %1770 = vmatpush.msk.msrb.mxu3 %vm200_vm0, %v1764_v50 }
  0x7e   : > { %1751 = vmatpush.msk.msrb.mxu0 %vm200_vm0, %v1749_v51  ;;  %1756 = vmatpush.msk.msrb.mxu1 %vm200_vm0, %v1750_v52 }
  0x7f   : > { %1115 = vmatpush.msrb.mxu2 %v1761_v53  ;;  %1144 = vmatpush.msrb.mxu3 %v1762_v54 }
  0x80   : > { %1038 = vmatpush.msrb.mxu0 %v1747_v55  ;;  %1067 = vmatpush.msrb.mxu1 %v1748_v56 }
  0x83   : > { %1689 = vmatmul.msk.f32.gmra.mxu0 %vm187_vm1, %v2085_v21  ;;  %1694 = vmatmul.msk.f32.gmra.mxu1 %vm187_vm1, %v2085_v21 }
  0x84   : > { %1703 = vmatmul.msk.f32.gmra.mxu2 %vm187_vm1, %v2085_v21  ;;  %1708 = vmatmul.msk.f32.gmra.mxu3 %vm187_vm1, %v2085_v21 }
  0x88   : > { %v2349_v24 = vpop.permute.xlu0 %498 }
  0x8b   : > { %1690 = vmatmul.msk.f32.gmra.mxu0 %vm187_vm1, %v2102_v22  ;;  %1695 = vmatmul.msk.f32.gmra.mxu1 %vm187_vm1, %v2102_v22 }
  0x8c   : > { %1704 = vmatmul.msk.f32.gmra.mxu2 %vm187_vm1, %v2102_v22  ;;  %1709 = vmatmul.msk.f32.gmra.mxu3 %vm187_vm1, %v2102_v22 }
  0x93   : > { %1691 = vmatmul.msk.f32.gmra.mxu0 %vm187_vm1, %v2122_v29  ;;  %1696 = vmatmul.msk.f32.gmra.mxu1 %vm187_vm1, %v2122_v29 }
  0x94   : > { %1705 = vmatmul.msk.f32.gmra.mxu2 %vm187_vm1, %v2122_v29  ;;  %1710 = vmatmul.msk.f32.gmra.mxu3 %vm187_vm1, %v2122_v29 }
  0x98   : > { %v224_v57 = vpop.f32.mrf.mxu0  ;;  %v253_v58 = vpop.f32.mrf.mxu1 }
  0x99   : > { %v2379_v46 = vpop.permute.xlu0 %503 }
  0x9b   : > { %1724 = vmatmul.msk.f32.vlgmr.msra.gmra.mxu0 %vm187_vm1, %v2056_v8  ;;  %1729 = vmatmul.msk.f32.vlgmr.msra.gmra.mxu1 %vm187_vm1, %v2056_v8 }
  0x9c   : > { %1738 = vmatmul.msk.f32.vlgmr.msra.gmra.mxu2 %vm187_vm1, %v2056_v8  ;;  %1743 = vmatmul.msk.f32.vlgmr.msra.gmra.mxu3 %vm187_vm1, %v2056_v8 }
  0x9d   : > { %1801 = vmatpush.msk.msra.mxu2 %vm200_vm0, %v1799_v59  ;;  %1806 = vmatpush.msk.msra.mxu3 %vm200_vm0, %v1800_v60  ;;  %v2397_v59 = vpop.permute.xlu1 %508  ;;  %v1825_v60 = vld [vmem:[%s2039_s28 + $0x1e0] sm:$0xff] }
  0x9e   : > { %1787 = vmatpush.msk.msra.mxu0 %vm200_vm0, %v1785_v1  ;;  %1792 = vmatpush.msk.msra.mxu1 %vm200_vm0, %v1786_v2 }
  0x9f   : > { %v293_v61 = vpop.f32.mrf.mxu2  ;;  %v322_v62 = vpop.f32.mrf.mxu3  ;;  %1286 = vmatpush.msra.mxu2 %v1797_v10  ;;  %1315 = vmatpush.msra.mxu3 %v1798_v11 }
  0xa0   : > { %v2285_v63 = vpop.f32.mrf.mxu0  ;;  %v2287_v0 = vpop.f32.mrf.mxu1  ;;  %1217 = vmatpush.msra.mxu0 %v1783_v14  ;;  %1246 = vmatpush.msra.mxu1 %v1784_v15  ;;  %v334_v20 = vmax.f32 %v224_v57, %v293_v61  ;;  %v335_v23 = vmax.f32 %v253_v58, %v322_v62  ;;  %v1826_v61 = vld [vmem:[%s2039_s28 + $0x1e8] sm:$0xff] }
  0xa3   : > { %1725 = vmatmul.msk.f32.gmra.mxu0 %vm187_vm1, %v2085_v21  ;;  %1730 = vmatmul.msk.f32.gmra.mxu1 %vm187_vm1, %v2085_v21 }
  0xa4   : > { %1739 = vmatmul.msk.f32.gmra.mxu2 %vm187_vm1, %v2085_v21  ;;  %1744 = vmatmul.msk.f32.gmra.mxu3 %vm187_vm1, %v2085_v21 }
  0xa7   : > { %v2301_v3 = vpop.f32.mrf.mxu2  ;;  %v2303_v4 = vpop.f32.mrf.mxu3 }
  0xa8   : > { %v2305_v5 = vpop.f32.mrf.mxu0  ;;  %v2307_v6 = vpop.f32.mrf.mxu1  ;;  %v336_v40 = vmax.f32 %v2285_v63, %v2301_v3  ;;  %v337_v41 = vmax.f32 %v2287_v0, %v2303_v4 }
  0xab   : > { %1726 = vmatmul.msk.f32.gmra.mxu0 %vm187_vm1, %v2102_v22  ;;  %1731 = vmatmul.msk.f32.gmra.mxu1 %vm187_vm1, %v2102_v22 }
  0xac   : > { %1740 = vmatmul.msk.f32.gmra.mxu2 %vm187_vm1, %v2102_v22  ;;  %1745 = vmatmul.msk.f32.gmra.mxu3 %vm187_vm1, %v2102_v22 }
  0xaf   : > { %v2317_v7 = vpop.f32.mrf.mxu2  ;;  %v2319_v9 = vpop.f32.mrf.mxu3 }
  0xb0   : > { %v2323_v12 = vpop.f32.mrf.mxu0  ;;  %v2325_v13 = vpop.f32.mrf.mxu1  ;;  %v338_v55 = vmax.f32 %v2305_v5, %v2317_v7  ;;  %v339_v56 = vmax.f32 %v2307_v6, %v2319_v9  ;;  %v1811_v6 = vld [vmem:[%s2039_s28 + $0x1c0] sm:$0xff]  ;;  %v1812_v7 = vld [vmem:[%s2039_s28 + $0x1c8] sm:$0xff]  ;;  %s1855_s28 = sshll.u32 %s2008_s16, 8  ;;  %s1530_s16 = sshll.u32 %s2376_s30, 4  ;;  %s1531_s16 = int_to_ptr.vmem [resolvable:$true] %s1530_s16 }
  0xb1   : > { %s1529_s6 = scalar_lea.hbm %s2609_s3, %s1855_s28 }
  0xb2   : > { %s1532_s7 = sshll.u32 %s1529_s6, 4  ;;  %s1533_s7 = int_to_ptr.hbm [resolvable:$true] %s1532_s7 }
  0xb3   : > { %1727 = vmatmul.msk.f32.gmra.mxu0 %vm187_vm1, %v2122_v29  ;;  %1732 = vmatmul.msk.f32.gmra.mxu1 %vm187_vm1, %v2122_v29  ;;  %s1914_s9 = sshra.s32 %s1533_s7, 4  ;;  %s1915_s9 = int_to_ptr.hbm [resolvable:$true] %s1914_s9 }
  0xb4   : > { %1741 = vmatmul.msk.f32.gmra.mxu2 %vm187_vm1, %v2122_v29  ;;  %1746 = vmatmul.msk.f32.gmra.mxu3 %vm187_vm1, %v2122_v29  ;;  %s1916_s10 = scalar_lea.hbm %s1915_s9, 256  ;;  %p1921_p0 = scmp.lt.s32.totalorder %s1915_s9, %s2609_s3 }
  0xb5   : > { %p1917_p11 = scmp.ne.s32.totalorder %s1915_s9, %s1916_s10  ;;  %p1922_p1 = scmp.lt.s32.totalorder %s1920_s19, %s1916_s10 }
  0xb7   : > { %v2337_v16 = vpop.f32.mrf.mxu2  ;;  %v2339_v17 = vpop.f32.mrf.mxu3  ;;  %p1918_p12 = pnand %p1917_p11, %p2025_p5  ;;  %p1923_p2 = por %p1922_p1, %p1921_p0 }
  0xb8   : > { %v370_v18 = vpop.f32.mrf.mxu0  ;;  %v399_v19 = vpop.f32.mrf.mxu1  ;;  %v340_v11 = vmax.f32 %v2323_v12, %v2337_v16  ;;  %v341_v14 = vmax.f32 %v2325_v13, %v2339_v17 }
  0xb9   : > { %v411_v25 = vmax.f32 %v334_v20, %v370_v18  ;;  %v412_v26 = vmax.f32 %v335_v23, %v399_v19  ;;  %v2421_v23 = vpop.permute.xlu1 %513  ;;  %p1919_p13 = pneg %p1918_p12 }
  0xbb   : > { %1752 = vmatmul.msk.f32.vlgmr.msrb.gmra.mxu0 %vm187_vm1, %v2056_v8  ;;  %1757 = vmatmul.msk.f32.vlgmr.msrb.gmra.mxu1 %vm187_vm1, %v2056_v8  ;;  %p1924_p3 = pnand %p1923_p2, %p1919_p13 }
  0xbc   : > { %1766 = vmatmul.msk.f32.vlgmr.msrb.gmra.mxu2 %vm187_vm1, %v2056_v8  ;;  %1771 = vmatmul.msk.f32.vlgmr.msrb.gmra.mxu3 %vm187_vm1, %v2056_v8 }
  0xbd   : > { %1829 = vmatpush.msk.msrb.mxu2 %vm200_vm0, %v1827_v30  ;;  %1834 = vmatpush.msk.msrb.mxu3 %vm200_vm0, %v1828_v31 }
  0xbe   : > { %1815 = vmatpush.msk.msrb.mxu0 %vm200_vm0, %v1813_v36  ;;  %1820 = vmatpush.msk.msrb.mxu1 %vm200_vm0, %v1814_v37 }
  0xbf   : > { %v447_v27 = vpop.f32.mrf.mxu2  ;;  %v476_v28 = vpop.f32.mrf.mxu3  ;;  %1440 = vmatpush.msrb.mxu2 %v1825_v60  ;;  %1469 = vmatpush.msrb.mxu3 %v1826_v61 }
  0xc0   : > { %v488_v32 = vmax.f32 %v411_v25, %v447_v27  ;;  %v489_v33 = vmax.f32 %v412_v26, %v476_v28  ;;  %v373_v34 = vpop.f32.mrf.mxu0  ;;  %v402_v35 = vpop.f32.mrf.mxu1  ;;  %1363 = vmatpush.msrb.mxu0 %v1811_v6  ;;  %1392 = vmatpush.msrb.mxu1 %v1812_v7 }
  0xc1   : > { %v413_v44 = vmax.f32 %v336_v40, %v373_v34  ;;  %v414_v45 = vmax.f32 %v337_v41, %v402_v35 }
  0xc2   : > { %v516_v38 = vadd.f32 %v2349_v24, %v488_v32  ;;  %v517_v39 = vadd.f32 %v2349_v24, %v489_v33 }
  0xc3   : > { %1753 = vmatmul.msk.f32.gmra.mxu0 %vm187_vm1, %v2085_v21  ;;  %1758 = vmatmul.msk.f32.gmra.mxu1 %vm187_vm1, %v2085_v21 }
  0xc4   : > { %v524_v42 = vmax.f32 %v516_v38, 0.0  ;;  %v525_v43 = vmax.f32 %v517_v39, 0.0  ;;  %1767 = vmatmul.msk.f32.gmra.mxu2 %vm187_vm1, %v2085_v21  ;;  %1772 = vmatmul.msk.f32.gmra.mxu3 %vm187_vm1, %v2085_v21 }
  0xc6   : > { %532 = vst [vmem:[%s2376_s30] sm:$0xff] %v524_v42 }
  0xc7   : > { %534 = vst.msk [vmem:[%s2376_s30 + $0x8] sm:$0xff] %vm533_vm2, %v525_v43  ;;  %v450_v47 = vpop.f32.mrf.mxu2  ;;  %v479_v48 = vpop.f32.mrf.mxu3 }
  0xc8   : > { %v490_v49 = vmax.f32 %v413_v44, %v450_v47  ;;  %v491_v50 = vmax.f32 %v414_v45, %v479_v48  ;;  %v376_v51 = vpop.f32.mrf.mxu0  ;;  %v405_v52 = vpop.f32.mrf.mxu1 }
  0xc9   : > { %v415_v62 = vmax.f32 %v338_v55, %v376_v51  ;;  %v416_v63 = vmax.f32 %v339_v56, %v405_v52 }
  0xca   : > { %v518_v53 = vadd.f32 %v2379_v46, %v490_v49  ;;  %v519_v54 = vadd.f32 %v2379_v46, %v491_v50 }
  0xcb   : > { %1754 = vmatmul.msk.f32.gmra.mxu0 %vm187_vm1, %v2102_v22  ;;  %1759 = vmatmul.msk.f32.gmra.mxu1 %vm187_vm1, %v2102_v22 }
  0xcc   : > { %v526_v57 = vmax.f32 %v518_v53, 0.0  ;;  %v527_v58 = vmax.f32 %v519_v54, 0.0  ;;  %1768 = vmatmul.msk.f32.gmra.mxu2 %vm187_vm1, %v2102_v22  ;;  %1773 = vmatmul.msk.f32.gmra.mxu3 %vm187_vm1, %v2102_v22 }
  0xce   : > { %535 = vst [vmem:[%s2376_s30 + $0x10] sm:$0xff] %v526_v57 }
  0xcf   : > { %536 = vst.msk [vmem:[%s2376_s30 + $0x18] sm:$0xff] %vm533_vm2, %v527_v58  ;;  %v453_v0 = vpop.f32.mrf.mxu2  ;;  %v482_v1 = vpop.f32.mrf.mxu3 }
  0xd0   : > { %v492_v2 = vmax.f32 %v415_v62, %v453_v0  ;;  %v493_v3 = vmax.f32 %v416_v63, %v482_v1  ;;  %v379_v4 = vpop.f32.mrf.mxu0  ;;  %v408_v5 = vpop.f32.mrf.mxu1 }
  0xd1   : > { %v417_v19 = vmax.f32 %v340_v11, %v379_v4  ;;  %v418_v20 = vmax.f32 %v341_v14, %v408_v5 }
  0xd2   : > { %v520_v9 = vadd.f32 %v2397_v59, %v492_v2  ;;  %v521_v10 = vadd.f32 %v2397_v59, %v493_v3 }
  0xd3   : > { %1755 = vmatmul.msk.f32.gmra.mxu0 %vm187_vm1, %v2122_v29  ;;  %1760 = vmatmul.msk.f32.gmra.mxu1 %vm187_vm1, %v2122_v29 }
  0xd4   : > { %v528_v15 = vmax.f32 %v520_v9, 0.0  ;;  %v529_v18 = vmax.f32 %v521_v10, 0.0  ;;  %1769 = vmatmul.msk.f32.gmra.mxu2 %vm187_vm1, %v2122_v29  ;;  %1774 = vmatmul.msk.f32.gmra.mxu3 %vm187_vm1, %v2122_v29 }
  0xd6   : > { %537 = vst [vmem:[%s2376_s30 + $0x20] sm:$0xff] %v528_v15 }
  0xd7   : > { %538 = vst.msk [vmem:[%s2376_s30 + $0x28] sm:$0xff] %vm533_vm2, %v529_v18  ;;  %v456_v12 = vpop.f32.mrf.mxu2  ;;  %v485_v16 = vpop.f32.mrf.mxu3 }
  0xd8   : > { %v494_v13 = vmax.f32 %v417_v19, %v456_v12  ;;  %v495_v17 = vmax.f32 %v418_v20, %v485_v16  ;;  %v569_v25 = vpop.f32.mrf.mxu0  ;;  %v598_v26 = vpop.f32.mrf.mxu1 }
  0xda   : > { %v522_v27 = vadd.f32 %v2421_v23, %v494_v13  ;;  %v523_v28 = vadd.f32 %v2421_v23, %v495_v17 }
  0xdb   : > { %1788 = vmatmul.msk.f32.vlgmr.msra.gmra.mxu0 %vm187_vm1, %v2056_v8  ;;  %1793 = vmatmul.msk.f32.vlgmr.msra.gmra.mxu1 %vm187_vm1, %v2056_v8 }
  0xdc   : > { %v530_v30 = vmax.f32 %v522_v27, 0.0  ;;  %v531_v31 = vmax.f32 %v523_v28, 0.0  ;;  %1802 = vmatmul.msk.f32.vlgmr.msra.gmra.mxu2 %vm187_vm1, %v2056_v8  ;;  %1807 = vmatmul.msk.f32.vlgmr.msra.gmra.mxu3 %vm187_vm1, %v2056_v8 }
  0xde   : > { %539 = vst [vmem:[%s2376_s30 + $0x30] sm:$0xff] %v530_v30 }
  0xdf   : > { %540 = vst.msk [vmem:[%s2376_s30 + $0x38] sm:$0xff] %vm533_vm2, %v531_v31  ;;  %v638_v32 = vpop.f32.mrf.mxu2  ;;  %v667_v33 = vpop.f32.mrf.mxu3 }
  0xe0   : > { %v572_v34 = vpop.f32.mrf.mxu0  ;;  %v601_v35 = vpop.f32.mrf.mxu1  ;;  %v679_v49 = vmax.f32 %v569_v25, %v638_v32  ;;  %v680_v50 = vmax.f32 %v598_v26, %v667_v33 }
  0xe3   : > { %1789 = vmatmul.msk.f32.gmra.mxu0 %vm187_vm1, %v2085_v21  ;;  %1794 = vmatmul.msk.f32.gmra.mxu1 %vm187_vm1, %v2085_v21 }
  0xe4   : > { %1803 = vmatmul.msk.f32.gmra.mxu2 %vm187_vm1, %v2085_v21  ;;  %1808 = vmatmul.msk.f32.gmra.mxu3 %vm187_vm1, %v2085_v21 }
  0xe7   : > { %v641_v36 = vpop.f32.mrf.mxu2  ;;  %v670_v37 = vpop.f32.mrf.mxu3 }
  0xe8   : > { %v2446_v38 = vpop.f32.mrf.mxu0  ;;  %v2448_v39 = vpop.f32.mrf.mxu1  ;;  %v682_v62 = vmax.f32 %v601_v35, %v670_v37 }
  0xeb   : > { %1790 = vmatmul.msk.f32.gmra.mxu0 %vm187_vm1, %v2102_v22  ;;  %1795 = vmatmul.msk.f32.gmra.mxu1 %vm187_vm1, %v2102_v22 }
  0xec   : > { %1804 = vmatmul.msk.f32.gmra.mxu2 %vm187_vm1, %v2102_v22  ;;  %1809 = vmatmul.msk.f32.gmra.mxu3 %vm187_vm1, %v2102_v22 }
  0xef   : > { %v644_v40 = vpop.f32.mrf.mxu2  ;;  %v673_v41 = vpop.f32.mrf.mxu3 }
  0xf0   : > { %v2458_v42 = vpop.f32.mrf.mxu0  ;;  %v2460_v43 = vpop.f32.mrf.mxu1  ;;  %v684_v14 = vmax.f32 %v2448_v39, %v673_v41 }
  0xf3   : > { %1791 = vmatmul.msk.f32.gmra.mxu0 %vm187_vm1, %v2122_v29  ;;  %1796 = vmatmul.msk.f32.gmra.mxu1 %vm187_vm1, %v2122_v29 }
  0xf4   : > { %1805 = vmatmul.msk.f32.gmra.mxu2 %vm187_vm1, %v2122_v29  ;;  %1810 = vmatmul.msk.f32.gmra.mxu3 %vm187_vm1, %v2122_v29 }
  0xf7   : > { %v2470_v44 = vpop.f32.mrf.mxu2  ;;  %v2472_v45 = vpop.f32.mrf.mxu3 }
  0xf8   : > { %v715_v47 = vpop.f32.mrf.mxu0  ;;  %v744_v48 = vpop.f32.mrf.mxu1  ;;  %v686_v30 = vmax.f32 %v2460_v43, %v2472_v45 }
  0xf9   : > { %v756_v51 = vmax.f32 %v679_v49, %v715_v47  ;;  %v757_v52 = vmax.f32 %v680_v50, %v744_v48 }
  0xfb   : > { %1816 = vmatmul.msk.f32.vlgmr.msrb.gmra.mxu0 %vm187_vm1, %v2056_v8  ;;  %1821 = vmatmul.msk.f32.vlgmr.msrb.gmra.mxu1 %vm187_vm1, %v2056_v8 }
  0xfc   : > { %1830 = vmatmul.msk.f32.vlgmr.msrb.gmra.mxu2 %vm187_vm1, %v2056_v8  ;;  %1835 = vmatmul.msk.f32.vlgmr.msrb.gmra.mxu3 %vm187_vm1, %v2056_v8  ;;  %v681_v8 = vmax.f32 %v572_v34, %v641_v36 }
  0xff   : > { %v792_v53 = vpop.f32.mrf.mxu2  ;;  %v821_v54 = vpop.f32.mrf.mxu3 }
 0x100   : > { %v833_v55 = vmax.f32 %v756_v51, %v792_v53  ;;  %v834_v56 = vmax.f32 %v757_v52, %v821_v54  ;;  %v718_v57 = vpop.f32.mrf.mxu0  ;;  %v747_v58 = vpop.f32.mrf.mxu1 }
 0x101   : > { %v758_v1 = vmax.f32 %v681_v8, %v718_v57  ;;  %v759_v2 = vmax.f32 %v682_v62, %v747_v58 }
 0x102   : > { %v841_v60 = vadd.f32 %v833_v55, %v2349_v24  ;;  %v842_v61 = vadd.f32 %v834_v56, %v2349_v24 }
 0x103   : > { %1817 = vmatmul.msk.f32.gmra.mxu0 %vm187_vm1, %v2085_v21  ;;  %1822 = vmatmul.msk.f32.gmra.mxu1 %vm187_vm1, %v2085_v21 }
 0x104   : > { %v849_v63 = vmax.f32 %v841_v60, 0.0  ;;  %v850_v0 = vmax.f32 %v842_v61, 0.0  ;;  %1831 = vmatmul.msk.f32.gmra.mxu2 %vm187_vm1, %v2085_v21  ;;  %1836 = vmatmul.msk.f32.gmra.mxu3 %vm187_vm1, %v2085_v21  ;;  %v683_v21 = vmax.f32 %v2446_v38, %v644_v40 }
 0x106   : > { %1711 = vst [vmem:[%s2376_s30 + $0x40] sm:$0xff] %v849_v63 }
 0x107   : > { %1712 = vst.msk [vmem:[%s2376_s30 + $0x48] sm:$0xff] %vm533_vm2, %v850_v0  ;;  %v795_v3 = vpop.f32.mrf.mxu2  ;;  %v824_v4 = vpop.f32.mrf.mxu3 }
 0x108   : > { %v835_v5 = vmax.f32 %v758_v1, %v795_v3  ;;  %v836_v6 = vmax.f32 %v759_v2, %v824_v4  ;;  %v721_v7 = vpop.f32.mrf.mxu0  ;;  %v750_v9 = vpop.f32.mrf.mxu1 }
 0x109   : > { %v760_v19 = vmax.f32 %v683_v21, %v721_v7  ;;  %v761_v20 = vmax.f32 %v684_v14, %v750_v9 }
 0x10a   : > { %v843_v10 = vadd.f32 %v835_v5, %v2379_v46  ;;  %v844_v11 = vadd.f32 %v836_v6, %v2379_v46 }
 0x10b   : > { %1818 = vmatmul.msk.f32.gmra.mxu0 %vm187_vm1, %v2102_v22  ;;  %1823 = vmatmul.msk.f32.gmra.mxu1 %vm187_vm1, %v2102_v22 }
 0x10c   : > { %v851_v15 = vmax.f32 %v843_v10, 0.0  ;;  %v852_v18 = vmax.f32 %v844_v11, 0.0  ;;  %1832 = vmatmul.msk.f32.gmra.mxu2 %vm187_vm1, %v2102_v22  ;;  %1837 = vmatmul.msk.f32.gmra.mxu3 %vm187_vm1, %v2102_v22  ;;  %v685_v22 = vmax.f32 %v2458_v42, %v2470_v44 }
 0x10e   : > { %1713 = vst [vmem:[%s2376_s30 + $0x50] sm:$0xff] %v851_v15 }
 0x10f   : > { %1714 = vst.msk [vmem:[%s2376_s30 + $0x58] sm:$0xff] %vm533_vm2, %v852_v18  ;;  %v798_v12 = vpop.f32.mrf.mxu2  ;;  %v827_v16 = vpop.f32.mrf.mxu3 }
 0x110   : > { %v837_v13 = vmax.f32 %v760_v19, %v798_v12  ;;  %v838_v17 = vmax.f32 %v761_v20, %v827_v16  ;;  %v724_v25 = vpop.f32.mrf.mxu0  ;;  %v753_v26 = vpop.f32.mrf.mxu1 }
 0x111   : > { %v762_v33 = vmax.f32 %v685_v22, %v724_v25  ;;  %v763_v34 = vmax.f32 %v686_v30, %v753_v26 }
 0x112   : > { %v845_v27 = vadd.f32 %v837_v13, %v2397_v59  ;;  %v846_v28 = vadd.f32 %v838_v17, %v2397_v59 }
 0x113   : > { %1819 = vmatmul.msk.f32.gmra.mxu0 %vm187_vm1, %v2122_v29  ;;  %1824 = vmatmul.msk.f32.gmra.mxu1 %vm187_vm1, %v2122_v29 }
 0x114   : > { %v853_v31 = vmax.f32 %v845_v27, 0.0  ;;  %v854_v32 = vmax.f32 %v846_v28, 0.0  ;;  %1833 = vmatmul.msk.f32.gmra.mxu2 %vm187_vm1, %v2122_v29  ;;  %1838 = vmatmul.msk.f32.gmra.mxu3 %vm187_vm1, %v2122_v29 }
 0x116   : > { %1715 = vst [vmem:[%s2376_s30 + $0x60] sm:$0xff] %v853_v31 }
 0x117   : > { %1716 = vst.msk [vmem:[%s2376_s30 + $0x68] sm:$0xff] %vm533_vm2, %v854_v32  ;;  %v801_v35 = vpop.f32.mrf.mxu2  ;;  %v830_v36 = vpop.f32.mrf.mxu3 }
 0x118   : > { %v839_v37 = vmax.f32 %v762_v33, %v801_v35  ;;  %v840_v38 = vmax.f32 %v763_v34, %v830_v36  ;;  %v894_v39 = vpop.f32.mrf.mxu0  ;;  %v923_v40 = vpop.f32.mrf.mxu1 }
 0x11a   : > { %v847_v41 = vadd.f32 %v839_v37, %v2421_v23  ;;  %v848_v42 = vadd.f32 %v840_v38, %v2421_v23 }
 0x11c   : > { %v855_v43 = vmax.f32 %v847_v41, 0.0  ;;  %v856_v44 = vmax.f32 %v848_v42, 0.0 }
 0x11e   : > { %1717 = vst [vmem:[%s2376_s30 + $0x70] sm:$0xff] %v855_v43 }
 0x11f   : > { %1718 = vst.msk [vmem:[%s2376_s30 + $0x78] sm:$0xff] %vm533_vm2, %v856_v44  ;;  %v963_v29 = vpop.f32.mrf.mxu2  ;;  %v992_v45 = vpop.f32.mrf.mxu3 }
 0x120   : > { %v897_v47 = vpop.f32.mrf.mxu0  ;;  %v926_v48 = vpop.f32.mrf.mxu1  ;;  %v1004_v8 = vmax.f32 %v894_v39, %v963_v29  ;;  %v1005_v62 = vmax.f32 %v923_v40, %v992_v45 }
 0x127   : > { %v966_v49 = vpop.f32.mrf.mxu2  ;;  %v995_v50 = vpop.f32.mrf.mxu3 }
 0x128   : > { %v900_v51 = vpop.f32.mrf.mxu0  ;;  %v929_v52 = vpop.f32.mrf.mxu1  ;;  %v1006_v10 = vmax.f32 %v897_v47, %v966_v49  ;;  %v1007_v11 = vmax.f32 %v926_v48, %v995_v50 }
 0x12f   : > { %v969_v53 = vpop.f32.mrf.mxu2  ;;  %v998_v54 = vpop.f32.mrf.mxu3 }
 0x130   : > { %v903_v55 = vpop.f32.mrf.mxu0  ;;  %v932_v56 = vpop.f32.mrf.mxu1  ;;  %v1008_v27 = vmax.f32 %v900_v51, %v969_v53  ;;  %v1009_v28 = vmax.f32 %v929_v52, %v998_v54 }
 0x137   : > { %v972_v57 = vpop.f32.mrf.mxu2  ;;  %v1001_v58 = vpop.f32.mrf.mxu3 }
 0x138   : > { %v1040_v60 = vpop.f32.mrf.mxu0  ;;  %v1069_v61 = vpop.f32.mrf.mxu1  ;;  %v1010_v41 = vmax.f32 %v903_v55, %v972_v57  ;;  %v1011_v42 = vmax.f32 %v932_v56, %v1001_v58 }
 0x139   : > { %v1081_v63 = vmax.f32 %v1004_v8, %v1040_v60  ;;  %v1082_v0 = vmax.f32 %v1005_v62, %v1069_v61 }
 0x13f   : > { %v1117_v1 = vpop.f32.mrf.mxu2  ;;  %v1146_v2 = vpop.f32.mrf.mxu3 }
 0x140   : > { %v1158_v3 = vmax.f32 %v1081_v63, %v1117_v1  ;;  %v1159_v4 = vmax.f32 %v1082_v0, %v1146_v2  ;;  %v1043_v5 = vpop.f32.mrf.mxu0  ;;  %v1072_v6 = vpop.f32.mrf.mxu1 }
 0x141   : > { %v1083_v15 = vmax.f32 %v1006_v10, %v1043_v5  ;;  %v1084_v18 = vmax.f32 %v1007_v11, %v1072_v6 }
 0x142   : > { %v1166_v7 = vadd.f32 %v1158_v3, %v2349_v24  ;;  %v1167_v9 = vadd.f32 %v1159_v4, %v2349_v24 }
 0x144   : > { %v1174_v21 = vmax.f32 %v1166_v7, 0.0  ;;  %v1175_v14 = vmax.f32 %v1167_v9, 0.0 }
 0x146   : > { %1775 = vst [vmem:[%s2376_s30 + $0x80] sm:$0xff] %v1174_v21 }
 0x147   : > { %1776 = vst.msk [vmem:[%s2376_s30 + $0x88] sm:$0xff] %vm533_vm2, %v1175_v14  ;;  %v1120_v19 = vpop.f32.mrf.mxu2  ;;  %v1149_v20 = vpop.f32.mrf.mxu3 }
 0x148   : > { %v1160_v12 = vmax.f32 %v1083_v15, %v1120_v19  ;;  %v1161_v16 = vmax.f32 %v1084_v18, %v1149_v20  ;;  %v1046_v13 = vpop.f32.mrf.mxu0  ;;  %v1075_v17 = vpop.f32.mrf.mxu1 }
 0x149   : > { %v1085_v31 = vmax.f32 %v1008_v27, %v1046_v13  ;;  %v1086_v32 = vmax.f32 %v1009_v28, %v1075_v17 }
 0x14a   : > { %v1168_v25 = vadd.f32 %v1160_v12, %v2379_v46  ;;  %v1169_v26 = vadd.f32 %v1161_v16, %v2379_v46 }
 0x14c   : > { %v1176_v22 = vmax.f32 %v1168_v25, 0.0  ;;  %v1177_v30 = vmax.f32 %v1169_v26, 0.0 }
 0x14e   : > { %1777 = vst [vmem:[%s2376_s30 + $0x90] sm:$0xff] %v1176_v22 }
 0x14f   : > { %1778 = vst.msk [vmem:[%s2376_s30 + $0x98] sm:$0xff] %vm533_vm2, %v1177_v30  ;;  %v1123_v33 = vpop.f32.mrf.mxu2  ;;  %v1152_v34 = vpop.f32.mrf.mxu3 }
 0x150   : > { %v1162_v35 = vmax.f32 %v1085_v31, %v1123_v33  ;;  %v1163_v36 = vmax.f32 %v1086_v32, %v1152_v34  ;;  %v1049_v37 = vpop.f32.mrf.mxu0  ;;  %v1078_v38 = vpop.f32.mrf.mxu1 }
 0x151   : > { %v1087_v29 = vmax.f32 %v1010_v41, %v1049_v37  ;;  %v1088_v45 = vmax.f32 %v1011_v42, %v1078_v38 }
 0x152   : > { %v1170_v39 = vadd.f32 %v1162_v35, %v2397_v59  ;;  %v1171_v40 = vadd.f32 %v1163_v36, %v2397_v59 }
 0x154   : > { %v1178_v43 = vmax.f32 %v1170_v39, 0.0  ;;  %v1179_v44 = vmax.f32 %v1171_v40, 0.0 }
 0x156   : > { %1779 = vst [vmem:[%s2376_s30 + $0xa0] sm:$0xff] %v1178_v43 }
 0x157   : > { %1780 = vst.msk [vmem:[%s2376_s30 + $0xa8] sm:$0xff] %vm533_vm2, %v1179_v44  ;;  %v1126_v47 = vpop.f32.mrf.mxu2  ;;  %v1155_v48 = vpop.f32.mrf.mxu3 }
 0x158   : > { %v1164_v49 = vmax.f32 %v1087_v29, %v1126_v47  ;;  %v1165_v50 = vmax.f32 %v1088_v45, %v1155_v48  ;;  %v1219_v51 = vpop.f32.mrf.mxu0  ;;  %v1248_v52 = vpop.f32.mrf.mxu1 }
 0x15a   : > { %v1172_v53 = vadd.f32 %v1164_v49, %v2421_v23  ;;  %v1173_v54 = vadd.f32 %v1165_v50, %v2421_v23 }
 0x15c   : > { %v1180_v55 = vmax.f32 %v1172_v53, 0.0  ;;  %v1181_v56 = vmax.f32 %v1173_v54, 0.0 }
 0x15e   : > { %1781 = vst [vmem:[%s2376_s30 + $0xb0] sm:$0xff] %v1180_v55 }
 0x15f   : > { %1782 = vst.msk [vmem:[%s2376_s30 + $0xb8] sm:$0xff] %vm533_vm2, %v1181_v56  ;;  %v1288_v57 = vpop.f32.mrf.mxu2  ;;  %v1317_v58 = vpop.f32.mrf.mxu3 }
 0x160   : > { %v1222_v60 = vpop.f32.mrf.mxu0  ;;  %v1251_v61 = vpop.f32.mrf.mxu1  ;;  %v1329_v10 = vmax.f32 %v1219_v51, %v1288_v57  ;;  %v1330_v11 = vmax.f32 %v1248_v52, %v1317_v58 }
 0x167   : > { %v1291_v8 = vpop.f32.mrf.mxu2  ;;  %v1320_v62 = vpop.f32.mrf.mxu3 }
 0x168   : > { %v1225_v63 = vpop.f32.mrf.mxu0  ;;  %v1254_v0 = vpop.f32.mrf.mxu1  ;;  %v1331_v25 = vmax.f32 %v1222_v60, %v1291_v8  ;;  %v1332_v26 = vmax.f32 %v1251_v61, %v1320_v62 }
 0x16f   : > { %v1294_v1 = vpop.f32.mrf.mxu2  ;;  %v1323_v2 = vpop.f32.mrf.mxu3 }
 0x170   : > { %v1228_v3 = vpop.f32.mrf.mxu0  ;;  %v1257_v4 = vpop.f32.mrf.mxu1  ;;  %v1333_v38 = vmax.f32 %v1225_v63, %v1294_v1  ;;  %v1334_v39 = vmax.f32 %v1254_v0, %v1323_v2 }
 0x177   : > { %v1297_v5 = vpop.f32.mrf.mxu2  ;;  %v1326_v6 = vpop.f32.mrf.mxu3 }
 0x178   : > { %v1365_v7 = vpop.f32.mrf.mxu0  ;;  %v1394_v9 = vpop.f32.mrf.mxu1  ;;  %v1335_v51 = vmax.f32 %v1228_v3, %v1297_v5  ;;  %v1336_v52 = vmax.f32 %v1257_v4, %v1326_v6 }
 0x179   : > { %v1406_v21 = vmax.f32 %v1329_v10, %v1365_v7  ;;  %v1407_v14 = vmax.f32 %v1330_v11, %v1394_v9 }
 0x17f   : > { %v1442_v15 = vpop.f32.mrf.mxu2  ;;  %v1471_v18 = vpop.f32.mrf.mxu3 }
 0x180   : > { %v1483_v19 = vmax.f32 %v1406_v21, %v1442_v15  ;;  %v1484_v20 = vmax.f32 %v1407_v14, %v1471_v18  ;;  %v1368_v12 = vpop.f32.mrf.mxu0  ;;  %v1397_v16 = vpop.f32.mrf.mxu1 }
 0x181   : > { %v1408_v22 = vmax.f32 %v1331_v25, %v1368_v12  ;;  %v1409_v30 = vmax.f32 %v1332_v26, %v1397_v16 }
 0x182   : > { %v1491_v13 = vadd.f32 %v1483_v19, %v2349_v24  ;;  %v1492_v17 = vadd.f32 %v1484_v20, %v2349_v24 }
 0x184   : > { %v1499_v27 = vmax.f32 %v1491_v13, 0.0  ;;  %v1500_v28 = vmax.f32 %v1492_v17, 0.0 }
 0x186   : > { %1839 = vst [vmem:[%s2376_s30 + $0xc0] sm:$0xff] %v1499_v27 }
 0x187   : > { %1840 = vst.msk [vmem:[%s2376_s30 + $0xc8] sm:$0xff] %vm533_vm2, %v1500_v28  ;;  %v1445_v31 = vpop.f32.mrf.mxu2  ;;  %v1474_v32 = vpop.f32.mrf.mxu3 }
 0x188   : > { %v1485_v33 = vmax.f32 %v1408_v22, %v1445_v31  ;;  %v1486_v34 = vmax.f32 %v1409_v30, %v1474_v32  ;;  %v1371_v35 = vpop.f32.mrf.mxu0  ;;  %v1400_v36 = vpop.f32.mrf.mxu1 }
 0x189   : > { %v1410_v42 = vmax.f32 %v1333_v38, %v1371_v35  ;;  %v1411_v43 = vmax.f32 %v1334_v39, %v1400_v36 }
 0x18a   : > { %v1493_v37 = vadd.f32 %v1485_v33, %v2379_v46  ;;  %v1494_v24 = vadd.f32 %v1486_v34, %v2379_v46 }
 0x18c   : > { %v1501_v40 = vmax.f32 %v1493_v37, 0.0  ;;  %v1502_v41 = vmax.f32 %v1494_v24, 0.0 }
 0x18e   : > { %1841 = vst [vmem:[%s2376_s30 + $0xd0] sm:$0xff] %v1501_v40 }
 0x18f   : > { %1842 = vst.msk [vmem:[%s2376_s30 + $0xd8] sm:$0xff] %vm533_vm2, %v1502_v41  ;;  %v1448_v44 = vpop.f32.mrf.mxu2  ;;  %v1477_v29 = vpop.f32.mrf.mxu3 }
 0x190   : > { %v1487_v45 = vmax.f32 %v1410_v42, %v1448_v44  ;;  %v1488_v47 = vmax.f32 %v1411_v43, %v1477_v29  ;;  %v1374_v49 = vpop.f32.mrf.mxu0  ;;  %v1403_v50 = vpop.f32.mrf.mxu1 }
 0x191   : > { %v1412_v55 = vmax.f32 %v1335_v51, %v1374_v49  ;;  %v1413_v56 = vmax.f32 %v1336_v52, %v1403_v50 }
 0x192   : > { %v1495_v48 = vadd.f32 %v1487_v45, %v2397_v59  ;;  %v1496_v46 = vadd.f32 %v1488_v47, %v2397_v59 }
 0x194   : > { %v1503_v53 = vmax.f32 %v1495_v48, 0.0  ;;  %v1504_v54 = vmax.f32 %v1496_v46, 0.0 }
 0x196   : > { %1843 = vst [vmem:[%s2376_s30 + $0xe0] sm:$0xff] %v1503_v53 }
 0x197   : > { %1844 = vst.msk [vmem:[%s2376_s30 + $0xe8] sm:$0xff] %vm533_vm2, %v1504_v54  ;;  %v1451_v59 = vpop.f32.mrf.mxu2  ;;  %v1480_v57 = vpop.f32.mrf.mxu3 }
 0x198   : > { %v1489_v58 = vmax.f32 %v1412_v55, %v1451_v59  ;;  %v1490_v60 = vmax.f32 %v1413_v56, %v1480_v57 }
 0x19a   : > { %v1497_v61 = vadd.f32 %v1489_v58, %v2421_v23  ;;  %v1498_v8 = vadd.f32 %v1490_v60, %v2421_v23 }
 0x19c   : > { %v1505_v62 = vmax.f32 %v1497_v61, 0.0  ;;  %v1506_v63 = vmax.f32 %v1498_v8, 0.0 }
 0x19e   : > { %1845 = vst [vmem:[%s2376_s30 + $0xf0] sm:$0xff] %v1505_v62 }
 0x19f   : > { %1846 = vst.msk [vmem:[%s2376_s30 + $0xf8] sm:$0xff] %vm533_vm2, %v1506_v63 }
 0x1a0   : > { %1927 = shalt.err (!%p1924_p3)
}
 0x1a1   : > { %s1965_s25 = smov 256   ;;  %s1966_s26 = smov 16  }
 0x1a2   : > { %1856 = dma.vmem_to_hbm [thread:$0]  (%p2025_p5), %s1531_s16, 4096, %s1533_s7, %s1517_s8, %s1965_s25, %s1965_s25, %s1966_s26  }
 0x1a3 PF: > { %p1862_p4 = scmp.ge.s32.totalorder %s1962_s15, 2  ;;  %s1547_s27 = sand.u32 1, %s1950_s12  }
 0x1a4   : > { %s1548_s29 = scalar_lea.sflag [#allocation3], %s1547_s27 }
 0x1a5   : > { %p1859_p7 = pnand %p1862_p4, %p2029_p6 }
 0x1a7   : > { %p1860_p8 = pneg %p1859_p7 }
 0x1a9   : > { %1945 = dma.done.wait (%p1860_p8), %s1548_s29, 4096  }
 0x1aa   : > { %1947 = vsyncadd (%p1860_p8), %s1548_s29, 4294963200  ;;  %p13_p9 = scmp.ge.s32.totalorder %s2012_s18, 4   ;;  %s2612_s12 = smov %s1954_s13 }
 0x1ab   : > { %s2613_s13 = smov %s1958_s14  ;;  %s2614_s14 = smov %s2023_s21 }
 0x1ac   : > { %s2615_s15 = smov %s2012_s18  ;;  %15 = sbr.rel (!%p13_p9) target bundleno = 3 (0x3), region = 85 }
 0x1b1   :  { %1554 = vsyncpa [#allocation3], 1 }
 0x1b2   :  { %1556 = vsyncpa [#allocation3 + $0x1], 1 }

</bundles_post_ra>
